<compile_context>
chip_gen: v7x
topology: tpu7x:2x2x1
jax: 0.10.0
libtpu: 0.0.40
codegen_flags: <defaults>
</compile_context>

<pallas_src>
import functools
import math

import jax
import jax.numpy as jnp
from jax import lax
from jax.experimental import pallas as pl
from jax.experimental.pallas import tpu as pltpu

_INV_SQRT2 = 1.0 / math.sqrt(2.0)


def _cdiv(a, b):
    return -(-a // b)


def _round_up(x, m):
    return ((x + m - 1) // m) * m


def _gelu_erf(x):
    # exact (erf-based) GELU, matching the PyTorch reference: x * 0.5 * (1 + erf(x/sqrt(2)))
    return x * 0.5 * (1.0 + lax.erf(x * _INV_SQRT2))


# ----------------------------------------------------------------------------- kernels
def _ffn_kernel(x_ref, w_ref, b_ref, o_ref):
    """x (tm, H) @ w (H, tn) + b (1, tn) -> erf-GELU -> o (tm, tn)."""
    x = x_ref[...].astype(w_ref.dtype)                 # in-kernel cast: no extra HBM pass
    acc = jnp.dot(x, w_ref[...], preferred_element_type=jnp.float32)   # MXU, f32 accumulate
    acc = acc + b_ref[...].astype(jnp.float32)
    o_ref[...] = _gelu_erf(acc).astype(o_ref.dtype)


def _ffn_kernel_kblocked(x_ref, w_ref, b_ref, o_ref, acc_ref):
    """K-blocked variant for very large H. grid = (col, row, k); k innermost / 'arbitrary'."""
    k = pl.program_id(2)

    @pl.when(k == 0)
    def _():
        acc_ref[...] = jnp.zeros_like(acc_ref)

    x = x_ref[...].astype(w_ref.dtype)
    acc_ref[...] += jnp.dot(x, w_ref[...], preferred_element_type=jnp.float32)

    @pl.when(k == pl.num_programs(2) - 1)
    def _():
        y = acc_ref[...] + b_ref[...].astype(jnp.float32)
        o_ref[...] = _gelu_erf(y).astype(o_ref.dtype)


# --------------------------------------------------------------------- VMEM / tile sizing
_DEFAULT_VMEM_CAPACITY = 64 * 1024 * 1024   # per-TC VMEM of the smallest generation (v7x)


def _vmem_limit_bytes():
    try:
        cap = int(pltpu.get_tpu_info().vmem_capacity_bytes)
    except Exception:                       # query unavailable -> assume v7x-sized VMEM
        cap = _DEFAULT_VMEM_CAPACITY
    # Leave headroom for Mosaic internal scratch / semaphores / pipeline bookkeeping:
    #   128 MiB parts (v5e/v6e) -> 96 MiB; 64 MiB parts (v7x) -> 48 MiB.
    return min(100 * 1024 * 1024, cap * 3 // 4)


def _select_tiles(M, H, I, x_itemsize, w_itemsize, o_itemsize, vmem_limit):
    budget = int(vmem_limit * 0.85)

    # K blocking only when H alone blows the working set (matters on v7x first).
    tk = H
    if H > 2048:
        for cand in range(1024, 127, -128):     # largest 128-multiple divisor of H
            if H % cand == 0:
                tk = cand
                break
    kblocked = tk != H
    wbuf = 2 if kblocked else 1                 # resident slab is single-buffered

    # tn: whole weight resident if it fits, else widest 128-aligned slab in half the budget.
    w_budget = budget // 2
    if (not kblocked) and H * I * w_itemsize * wbuf <= w_budget:
        tn = I                                  # weight DMA'd exactly once per call
    else:
        per_col = (tk * w_itemsize * 2) if kblocked else (H * w_itemsize * wbuf)
        tn = (w_budget // per_col) // 128 * 128
        tn = max(128, min(tn, _round_up(I, 128)))
    w_tile_bytes = (tk if kblocked else H) * tn * w_itemsize * wbuf

    # tm: biggest MXU-friendly row tile that still fits the remaining budget.
    remaining = budget - w_tile_bytes - tn * 4
    tm = 8
    for cand in (512, 384, 256, 128, 64, 32, 16, 8):
        per = (cand * tk * x_itemsize * 2        # x block (double-buffered)
               + cand * tn * o_itemsize * 2      # out block (double-buffered)
               + cand * tn * 4 * 2)              # in-kernel f32 intermediates
        if kblocked:
            per += cand * tn * 4                 # f32 accumulator scratch
        if per <= remaining:
            tm = cand
            break
    tm = min(tm, _round_up(M, 8))

    # Megacore (v7x: 2 TCs): when the column axis cannot be sharded, split the row axis.
    if _cdiv(I, tn) == 1 and _cdiv(M, tm) < 2 and M >= 16:
        tm = max(8, _round_up(_cdiv(M, 2), 8))

    return tm, tn, tk, kblocked


# --------------------------------------------------------------------------- pallas_call
@functools.partial(
    jax.jit,
    static_argnames=("tm", "tn", "tk", "vmem_limit", "single_buffer_weight"))
def _bert_intermediate_2d(x2d, weight, bias, *, tm, tn, tk, vmem_limit,
                          single_buffer_weight):
    M, H = x2d.shape
    I = weight.shape[1]
    b2d = bias.reshape(1, I).astype(jnp.float32)

    grid_j = _cdiv(I, tn)       # column blocks (SLOW axis -> weight stays VMEM-resident)
    grid_i = _cdiv(M, tm)       # row blocks (FAST axis)
    nk = _cdiv(H, tk)

    cost = pl.CostEstimate(
        flops=2 * M * H * I,
        transcendentals=M * I,                  # one erf per output element
        bytes_accessed=(M * H * x2d.dtype.itemsize + H * I * weight.dtype.itemsize
                        + I * 4 + M * I * x2d.dtype.itemsize),
    )
    out_shape = jax.ShapeDtypeStruct((M, I), x2d.dtype)

    if nk == 1:
        # Weight/bias block index only changes with the slow axis j -> single-buffer them.
        w_mode = pl.Buffered(1) if single_buffer_weight else None
        grid_spec = pltpu.PrefetchScalarGridSpec(
            num_scalar_prefetch=0,
            grid=(grid_j, grid_i),
            in_specs=[
                pl.BlockSpec((tm, H), lambda j, i: (i, 0)),                         # x rows
                pl.BlockSpec((H, tn), lambda j, i: (0, j), pipeline_mode=w_mode),   # weight
                pl.BlockSpec((1, tn), lambda j, i: (0, j), pipeline_mode=w_mode),   # bias
            ],
            out_specs=pl.BlockSpec((tm, tn), lambda j, i: (i, j)),
        )
        return pl.pallas_call(
            _ffn_kernel, out_shape=out_shape, grid_spec=grid_spec,
            compiler_params=pltpu.CompilerParams(
                dimension_semantics=("parallel", "parallel"),
                vmem_limit_bytes=vmem_limit),
            cost_estimate=cost,
        )(x2d, weight, b2d)

    # K-blocked path (H very large): reduction axis last + 'arbitrary', f32 VMEM accumulator.
    grid_spec = pltpu.PrefetchScalarGridSpec(
        num_scalar_prefetch=0,
        grid=(grid_j, grid_i, nk),
        in_specs=[
            pl.BlockSpec((tm, tk), lambda j, i, k: (i, k)),
            pl.BlockSpec((tk, tn), lambda j, i, k: (k, j)),
            pl.BlockSpec((1, tn), lambda j, i, k: (0, j)),
        ],
        out_specs=pl.BlockSpec((tm, tn), lambda j, i, k: (i, j)),
        scratch_shapes=[pltpu.VMEM((tm, tn), jnp.float32)],
    )
    return pl.pallas_call(
        _ffn_kernel_kblocked, out_shape=out_shape, grid_spec=grid_spec,
        compiler_params=pltpu.CompilerParams(
            dimension_semantics=("parallel", "parallel", "arbitrary"),
            vmem_limit_bytes=vmem_limit),
        cost_estimate=cost,
    )(x2d, weight, b2d)


# ------------------------------------------------------------------------------ wrappers
def prepare_params(weight, bias, compute_dtype=jnp.bfloat16):
    """One-time parameter prep (call at model-load time, NOT per step).

    `weight` is (hidden, intermediate), i.e. torch `Linear.weight.T`. Casting the weight to
    bf16 here (instead of per call) avoids an extra full HBM read+write of the weight on
    every invocation while the MXU runs at its native bf16 rate; accumulation stays f32.
    Pass compute_dtype=jnp.float32 for bit-exact f32 semantics.
    """
    return weight.astype(compute_dtype), bias.astype(jnp.float32)


_SINGLE_BUFFER_WEIGHT_OK = True     # flipped off if pl.Buffered(1) is unsupported


def bert_intermediate(hidden_states, weight, bias):
    """BertIntermediate forward: erf-GELU(hidden_states @ weight + bias).

    hidden_states: (B, S, H); weight: (H, I) in its compute dtype; bias: (I,). -> (B, S, I)
    """
    global _SINGLE_BUFFER_WEIGHT_OK
    B, S, H = hidden_states.shape
    Hw, I = weight.shape
    assert Hw == H and bias.shape == (I,)
    M = B * S

    vmem_limit = _vmem_limit_bytes()
    tm, tn, tk, _ = _select_tiles(
        M, H, I,
        x_itemsize=jnp.dtype(hidden_states.dtype).itemsize,
        w_itemsize=jnp.dtype(weight.dtype).itemsize,
        o_itemsize=jnp.dtype(hidden_states.dtype).itemsize,
        vmem_limit=vmem_limit)

    x2d = hidden_states.reshape(M, H)       # free: row-major metadata reshape
    kwargs = dict(tm=tm, tn=tn, tk=tk, vmem_limit=vmem_limit)

    out2d = None
    if _SINGLE_BUFFER_WEIGHT_OK:
        try:
            out2d = _bert_intermediate_2d(x2d, weight, bias,
                                          single_buffer_weight=True, **kwargs)
        except Exception:
            # pl.Buffered(1) not supported on this jax build -> default double buffering.
            _SINGLE_BUFFER_WEIGHT_OK = False
    if out2d is None:
        out2d = _bert_intermediate_2d(x2d, weight, bias,
                                      single_buffer_weight=False, **kwargs)
    return out2d.reshape(B, S, I)


def _reference(hidden_states, weight, bias):
    y = jnp.einsum("bsh,hi->bsi", hidden_states, weight) + bias
    return y * 0.5 * (1.0 + lax.erf(y / math.sqrt(2.0)))


if __name__ == "__main__":
    # Synthetic config: hidden_size=32, intermediate_size=128, batch=2, seq=8.
    B, S, H, I = 2, 8, 32, 128
    key = jax.random.PRNGKey(0)
    kx, kw, kb = jax.random.split(key, 3)

    hidden_states = jax.random.normal(kx, (B, S, H), dtype=jnp.float32)
    # PyTorch Linear stores weight as (I, H); we consume the transposed (H, I) layout.
    weight_f32 = jax.random.normal(kw, (H, I), dtype=jnp.float32) * (1.0 / math.sqrt(H))
    bias = jax.random.normal(kb, (I,), dtype=jnp.float32) * 0.02

    ref = _reference(hidden_states, weight_f32, bias)

    # Default fast path: bf16 weight (cast once at load time), f32 accumulation in-kernel.
    w_bf16, b_prep = prepare_params(weight_f32, bias)
    out = jax.block_until_ready(bert_intermediate(hidden_states, w_bf16, b_prep))
    assert out.shape == (B, S, I)
    assert jnp.allclose(out, ref, atol=5e-2, rtol=5e-2), "bf16 path mismatch vs reference"

    # Exact f32 path (bit-for-bit module semantics).
    out_f32 = jax.block_until_ready(bert_intermediate(hidden_states, weight_f32, bias))
    assert jnp.allclose(out_f32, ref, atol=1e-5, rtol=1e-5), "f32 path mismatch vs reference"

    # Ragged shapes (M not a multiple of 8, I not a multiple of 128): no wrapper-side padding.
    B2, S2, H2, I2 = 1, 10, 48, 200
    kx2, kw2, kb2 = jax.random.split(jax.random.PRNGKey(1), 3)
    hs2 = jax.random.normal(kx2, (B2, S2, H2), dtype=jnp.float32)
    w2 = jax.random.normal(kw2, (H2, I2), dtype=jnp.float32) * (1.0 / math.sqrt(H2))
    b2 = jax.random.normal(kb2, (I2,), dtype=jnp.float32) * 0.02
    out2 = jax.block_until_ready(bert_intermediate(hs2, w2, b2))
    assert jnp.allclose(out2, _reference(hs2, w2, b2), atol=1e-4, rtol=1e-4), "ragged mismatch"

    print("KERNEL_OK")
</pallas_src>

<mosaic_0001>
module attributes {stable_mosaic.version = 11 : i64} {
  func.func @_ffn_kernel(%arg0: i32, %arg1: i32, %arg2: memref<8x32xf32, #tpu.memory_space<vmem>>, %arg3: memref<32x128xbf16, #tpu.memory_space<vmem>>, %arg4: memref<1x128xf32, #tpu.memory_space<vmem>>, %arg5: memref<8x128xf32, #tpu.memory_space<vmem>>) attributes {dimension_semantics = [#tpu.dimension_semantics<parallel>, #tpu.dimension_semantics<parallel>], iteration_bounds = array<i64: 1, 2>, scalar_prefetch = 0 : i64, scratch_operands = 0 : i64, tpu.core_type = #tpu.core_type<tc>, window_params = [{transform_indices = @transform_0, window_bounds = array<i64: 8, 32>}, {pipeline_mode = #tpu.pipeline_mode<synchronous>, transform_indices = @transform_1, window_bounds = array<i64: 32, 128>}, {pipeline_mode = #tpu.pipeline_mode<synchronous>, transform_indices = @transform_2, window_bounds = array<i64: 1, 128>}, {transform_indices = @transform_3, window_bounds = array<i64: 8, 128>}]} {
    %c0 = arith.constant 0 : index
    %c0_0 = arith.constant 0 : index
    %0 = vector.load %arg2[%c0, %c0_0] : memref<8x32xf32, #tpu.memory_space<vmem>>, vector<8x32xf32>
    %1 = arith.truncf %0 : vector<8x32xf32> to vector<8x32xbf16>
    %c0_1 = arith.constant 0 : index
    %c0_2 = arith.constant 0 : index
    %2 = vector.load %arg3[%c0_1, %c0_2] : memref<32x128xbf16, #tpu.memory_space<vmem>>, vector<32x128xbf16>
    %cst = arith.constant dense<0.000000e+00> : vector<8x128xf32>
    %3 = tpu.matmul %1, %2, %cst {dimension_numbers = #tpu.dot_dimension_numbers<[1], [0], [0], [1], [0, 0, 1, 1], [], []>} : vector<8x32xbf16>, vector<32x128xbf16>, vector<8x128xf32> -> vector<8x128xf32>
    %c0_3 = arith.constant 0 : index
    %c0_4 = arith.constant 0 : index
    %4 = vector.load %arg4[%c0_3, %c0_4] : memref<1x128xf32, #tpu.memory_space<vmem>>, vector<1x128xf32>
    %5 = vector.broadcast %4 : vector<1x128xf32> to vector<8x128xf32>
    %6 = arith.addf %3, %5 : vector<8x128xf32>
    %cst_5 = arith.constant 5.000000e-01 : f32
    %7 = vector.broadcast %cst_5 : f32 to vector<8x128xf32>
    %8 = arith.mulf %6, %7 : vector<8x128xf32>
    %cst_6 = arith.constant 0.707106769 : f32
    %9 = vector.broadcast %cst_6 : f32 to vector<8x128xf32>
    %10 = arith.mulf %6, %9 : vector<8x128xf32>
    %11 = math.erf %10 : vector<8x128xf32>
    %cst_7 = arith.constant 1.000000e+00 : f32
    %12 = vector.broadcast %cst_7 : f32 to vector<8x128xf32>
    %13 = arith.addf %12, %11 : vector<8x128xf32>
    %14 = arith.mulf %8, %13 : vector<8x128xf32>
    %c0_8 = arith.constant 0 : index
    %c0_9 = arith.constant 0 : index
    %15 = vector.load %arg5[%c0_8, %c0_9] : memref<8x128xf32, #tpu.memory_space<vmem>>, vector<8x128xf32>
    tpu.vector_store %arg5[%c0_8, %c0_9], %14 {strides = array<i32>} : memref<8x128xf32, #tpu.memory_space<vmem>>, vector<8x128xf32>,
    return
  }
  func.func @transform_0(%arg0: i32, %arg1: i32) -> (i32, i32) {
    %c0_i32 = arith.constant 0 : i32
    %c0_i32_0 = arith.constant 0 : i32
    return %arg1, %c0_i32 : i32, i32
  }
  func.func @transform_1(%arg0: i32, %arg1: i32) -> (i32, i32) {
    %c0_i32 = arith.constant 0 : i32
    %c0_i32_0 = arith.constant 0 : i32
    return %c0_i32, %arg0 : i32, i32
  }
  func.func @transform_2(%arg0: i32, %arg1: i32) -> (i32, i32) {
    %c0_i32 = arith.constant 0 : i32
    %c0_i32_0 = arith.constant 0 : i32
    return %c0_i32, %arg0 : i32, i32
  }
  func.func @transform_3(%arg0: i32, %arg1: i32) -> (i32, i32) {
    %c0_i32 = arith.constant 0 : i32
    return %arg1, %arg0 : i32, i32
  }
}

module attributes {stable_mosaic.version = 11 : i64} {
  func.func @_ffn_kernel(%arg0: i32, %arg1: i32, %arg2: memref<8x32xf32, #tpu.memory_space<vmem>>, %arg3: memref<32x128xbf16, #tpu.memory_space<vmem>>, %arg4: memref<1x128xf32, #tpu.memory_space<vmem>>, %arg5: memref<8x128xf32, #tpu.memory_space<vmem>>) attributes {dimension_semantics = [#tpu.dimension_semantics<parallel>, #tpu.dimension_semantics<parallel>], iteration_bounds = array<i64: 1, 2>, scalar_prefetch = 0 : i64, scratch_operands = 0 : i64, tpu.core_type = #tpu.core_type<tc>, window_params = [{transform_indices = @transform_0, window_bounds = array<i64: 8, 32>}, {transform_indices = @transform_1, window_bounds = array<i64: 32, 128>}, {transform_indices = @transform_2, window_bounds = array<i64: 1, 128>}, {transform_indices = @transform_3, window_bounds = array<i64: 8, 128>}]} {
    %c0 = arith.constant 0 : index
    %c0_0 = arith.constant 0 : index
    %0 = vector.load %arg2[%c0, %c0_0] : memref<8x32xf32, #tpu.memory_space<vmem>>, vector<8x32xf32>
    %1 = arith.truncf %0 : vector<8x32xf32> to vector<8x32xbf16>
    %c0_1 = arith.constant 0 : index
    %c0_2 = arith.constant 0 : index
    %2 = vector.load %arg3[%c0_1, %c0_2] : memref<32x128xbf16, #tpu.memory_space<vmem>>, vector<32x128xbf16>
    %cst = arith.constant dense<0.000000e+00> : vector<8x128xf32>
    %3 = tpu.matmul %1, %2, %cst {dimension_numbers = #tpu.dot_dimension_numbers<[1], [0], [0], [1], [0, 0, 1, 1], [], []>} : vector<8x32xbf16>, vector<32x128xbf16>, vector<8x128xf32> -> vector<8x128xf32>
    %c0_3 = arith.constant 0 : index
    %c0_4 = arith.constant 0 : index
    %4 = vector.load %arg4[%c0_3, %c0_4] : memref<1x128xf32, #tpu.memory_space<vmem>>, vector<1x128xf32>
    %5 = vector.broadcast %4 : vector<1x128xf32> to vector<8x128xf32>
    %6 = arith.addf %3, %5 : vector<8x128xf32>
    %cst_5 = arith.constant 5.000000e-01 : f32
    %7 = vector.broadcast %cst_5 : f32 to vector<8x128xf32>
    %8 = arith.mulf %6, %7 : vector<8x128xf32>
    %cst_6 = arith.constant 0.707106769 : f32
    %9 = vector.broadcast %cst_6 : f32 to vector<8x128xf32>
    %10 = arith.mulf %6, %9 : vector<8x128xf32>
    %11 = math.erf %10 : vector<8x128xf32>
    %cst_7 = arith.constant 1.000000e+00 : f32
    %12 = vector.broadcast %cst_7 : f32 to vector<8x128xf32>
    %13 = arith.addf %12, %11 : vector<8x128xf32>
    %14 = arith.mulf %8, %13 : vector<8x128xf32>
    %c0_8 = arith.constant 0 : index
    %c0_9 = arith.constant 0 : index
    %15 = vector.load %arg5[%c0_8, %c0_9] : memref<8x128xf32, #tpu.memory_space<vmem>>, vector<8x128xf32>
    tpu.vector_store %arg5[%c0_8, %c0_9], %14 {strides = array<i32>} : memref<8x128xf32, #tpu.memory_space<vmem>>, vector<8x128xf32>,
    return
  }
  func.func @transform_0(%arg0: i32, %arg1: i32) -> (i32, i32) {
    %c0_i32 = arith.constant 0 : i32
    %c0_i32_0 = arith.constant 0 : i32
    return %arg1, %c0_i32 : i32, i32
  }
  func.func @transform_1(%arg0: i32, %arg1: i32) -> (i32, i32) {
    %c0_i32 = arith.constant 0 : i32
    %c0_i32_0 = arith.constant 0 : i32
    return %c0_i32, %arg0 : i32, i32
  }
  func.func @transform_2(%arg0: i32, %arg1: i32) -> (i32, i32) {
    %c0_i32 = arith.constant 0 : i32
    %c0_i32_0 = arith.constant 0 : i32
    return %c0_i32, %arg0 : i32, i32
  }
  func.func @transform_3(%arg0: i32, %arg1: i32) -> (i32, i32) {
    %c0_i32 = arith.constant 0 : i32
    return %arg1, %arg0 : i32, i32
  }
}

</mosaic_0001>

<bundles_post_ra>
// kernel: _bert_intermediate_2d.1
= control target key start
LH: loop header
LB: loop body
LE: loop exit
PB: predicated region body
PF: predicated region fallthrough
CT: control target
= control target key end

     0   :  { %8 = vsyncpa [#allocation3], 0  ;;  %s936_s0 = inlined_call_operand.hbm [shape: f32[16,32], index: 0, kind: input, shape index: {}]   ;;  %s937_s1 = inlined_call_operand.hbm [shape: bf16[32,128], index: 1, kind: input, shape index: {}]   ;;  %s938_s2 = inlined_call_operand.vmem [shape: f32[1,128], index: 2, kind: input, shape index: {}]   ;;  %s939_s3 = inlined_call_operand.hbm [shape: f32[16,128], index: 3, kind: output, shape index: {}]  }
   0x1   :  { %10 = vsyncpa [#allocation3 + $0x1], 0 }
   0x2   :  { %11 = vsyncpa [#allocation6], 0 }
   0x3   :  { %12 = vsyncpa [#allocation4], 0 }
   0x4   :  { %14 = vsyncpa [#allocation4 + $0x1], 0  ;;  %s715_s12 = smov 0   ;;  %s717_s13 = smov 0  }
   0x5   :  { %s719_s14 = smov 0   ;;  %s721_s15 = smov 0  }
   0x6   :  { %s723_s16 = smov 0   ;;  %s725_s17 = smov 0  }
   0x7 LB: > { %s430_s18 = sadd.s32 4294967295, %s686_s17   ;;  %s431_s19 = sadd.s32 4294967294, %s686_s17   ;;  %s686_s17 = sphi %s725_s17, %s20_s17   ;;  %s682_s16 = sphi %s723_s16, %s963_s16   ;;  %s678_s15 = sphi %s721_s15, %s962_s15   ;;  %s674_s14 = sphi %s719_s14, %s961_s14   ;;  %s670_s13 = sphi %s717_s13, %s960_s13   ;;  %s666_s12 = sphi %s715_s12, %s959_s12  }
   0x8   : > { %p52_p0 = scmp.ne.s32.totalorder %s670_s13, %s666_s12  ;;  %p749_p1 = scmp.eq.s32.totalorder %s430_s18, 0 }
   0x9   : > { %p753_p2 = scmp.eq.s32.totalorder %s430_s18, 1  ;;  %p136_p3 = scmp.eq.s32.totalorder %s431_s19, 1 }
   0xa   : > { %s944_s20 = scalar_select %p749_p1, 1, 0 }
   0xb   : > { %s945_s21 = scalar_select %p753_p2, 1, 0 }
   0xc   : > { %p759_p4 = por %p749_p1, %p52_p0  ;;  %p432_p5 = scmp.ge.s32.totalorder %s686_s17, 1 }
   0xd   : > { %p764_p6 = por %p136_p3, %p52_p0  ;;  %p143_p7 = scmp.lt.s32.totalorder %s686_s17, 3 }
   0xe   : > { %s946_s22 = scalar_select %p759_p4, 1, 0 }
   0xf   : > { %s947_s23 = scalar_select %p764_p6, 1, 0 }
  0x10   : > { %p769_p8 = pnand %p432_p5, %p143_p7  ;;  %s688_s25 = smov [#allocation5]  }
  0x11   : > { %s157_s26 = sshll.u32 %s688_s25, 4  ;;  %s29_s28 = sadd.s32 1, %s682_s16  ;;  %s158_s26 = int_to_ptr.vmem [resolvable:$true] %s157_s26 }
  0x12   : > { %s948_s24 = scalar_select %p769_p8, 1, 0 }
  0x13   : > { %p469_p9 = pneg %p769_p8  ;;  %s542_s4 = scalar_lea.hbm %s937_s1, 256 }
  0x14   : > { %p543_p12 = scmp.ne.s32.totalorder %s937_s1, %s542_s4  ;;  %p549_p5 = scmp.lt.u32.totalorder %s542_s4, %s937_s1 }
  0x15   : > { %p778_p11 = pnand %p469_p9, %p749_p1 }
  0x17   : > { %p544_p13 = pneg %p778_p11 }
  0x19   : > { %p545_p0 = pnand %p544_p13, %p543_p12 }
  0x1b   : > { %p546_p3 = pneg %p545_p0 }
  0x1d   : > { %p551_p7 = pnand %p549_p5, %p546_p3 }
  0x1f   : > { %554 = shalt.err (!%p551_p7)
}
  0x20   : > { %s555_s9 = scalar_lea.vmem %s158_s26, 256  ;;  %p563_p1 = scmp.lt.s32.totalorder %s158_s26, %s158_s26 }
  0x21   : > { %p556_p9 = scmp.ne.s32.totalorder %s158_s26, %s555_s9  ;;  %p564_p4 = scmp.lt.s32.totalorder %s555_s9, %s555_s9 }
  0x23   : > { %p558_p10 = pnand %p556_p9, %p544_p13  ;;  %p565_p8 = por %p564_p4, %p563_p1 }
  0x25   : > { %p559_p6 = pneg %p558_p10 }
  0x27   : > { %p566_p2 = pnand %p565_p8, %p559_p6 }
  0x29   : > { %569 = shalt.err (!%p566_p2)
}
  0x2a   : > { %s689_s10 = smov 64   ;;  %s690_s11 = smov 4  }
  0x2b   : > { %472 = dma.hbm_to_vmem [thread:$0]  (!%p778_p11), %s937_s1, 256, %s158_s26, [#allocation6], %s689_s10, %s689_s10, %s690_s11  }
  0x2c   : > { %p30_p1 = scmp.ge.s32.totalorder %s29_s28, 2  ;;  %s39_s25 = sadd.s32 1, %s674_s14 }
  0x2d   : > { %p46_p2 = scmp.ne.s32.totalorder %s674_s14, %s670_s13  ;;  %p47_p4 = scmp.eq.s32.totalorder %s686_s17, 0 }
  0x2e   : > { %s965_s28 = smov (%p30_p1, %s29_s28), 0  ;;  %p951_p8 = scmp.ne.s32.totalorder %s945_s21, 0 }
  0x2f   : > { %p805_p6 = por %p47_p4, %p46_p2  ;;  %s36_s27 = ssub.s32 %s682_s16, %s965_s28 }
  0x30   : > { %p811_p10 = por %p951_p8, %p46_p2  ;;  %p482_p12 = scmp.lt.s32.totalorder %s686_s17, 2 }
  0x31   : > { %p37_p11 = scmp.eq.s32.totalorder %s36_s27, 0  ;;  %s177_s26 = sand.u32 1, %s674_s14  }
  0x32   : > { %s436_s4 = sshll.u32 %s177_s26, 3  ;;  %s437_s6 = sshll.u32 %s682_s16, 7 }
  0x33   : > { %s820_s5 = scalar_select %p37_p11, %s674_s14, %s39_s25  }
  0x34   : > { %s826_s9 = scalar_lea.hbm %s936_s0, %s437_s6  ;;  %s181_s21 = scalar_lea.vmem [#allocation2], %s436_s4 }
  0x35   : > { %s188_s10 = sshll.u32 %s181_s21, 4  ;;  %p832_p13 = pnand %p482_p12, %p805_p6  ;;  %s828_s10 = int_to_ptr.vmem [resolvable:$true] %s188_s10 }
  0x36   : > { %s178_s18 = scalar_lea.sflag [#allocation3], %s177_s26  ;;  %s570_s19 = scalar_lea.hbm %s826_s9, 128 }
  0x37   : > { %p571_p0 = scmp.ne.s32.totalorder %s826_s9, %s570_s19  ;;  %p572_p3 = pneg %p832_p13 }
  0x38   : > { %s575_s4 = scalar_lea.hbm %s936_s0, 256  ;;  %p576_p9 = scmp.lt.u32.totalorder %s826_s9, %s936_s0 }
  0x39   : > { %p573_p5 = pnand %p572_p3, %p571_p0  ;;  %p577_p1 = scmp.lt.u32.totalorder %s575_s4, %s570_s19 }
  0x3a   : > { %p579_p4 = scmp.lt.u32.totalorder %s570_s19, %s826_s9 }
  0x3b   : > { %p574_p7 = pneg %p573_p5  ;;  %p578_p2 = por %p577_p1, %p576_p9 }
  0x3d   : > { %p580_p6 = por %p579_p4, %p578_p2 }
  0x3f   : > { %p581_p8 = pnand %p580_p6, %p574_p7 }
  0x41   : > { %584 = shalt.err (!%p581_p8)
}
  0x42   : > { %s585_s26 = scalar_lea.vmem %s828_s10, 128  ;;  %s691_s7 = smov [#allocation2]  }
  0x43   : > { %p586_p12 = scmp.ne.s32.totalorder %s828_s10, %s585_s26  ;;  %s590_s8 = sshll.u32 %s691_s7, 4  ;;  %s591_s8 = int_to_ptr.vmem [resolvable:$false] %s590_s8 }
  0x44   : > { %s592_s21 = scalar_lea.vmem %s591_s8, 256  ;;  %p593_p5 = scmp.lt.s32.totalorder %s828_s10, %s591_s8 }
  0x45   : > { %p588_p11 = pnand %p586_p12, %p572_p3  ;;  %p594_p9 = scmp.lt.s32.totalorder %s592_s21, %s585_s26 }
  0x47   : > { %p589_p0 = pneg %p588_p11  ;;  %p595_p1 = por %p594_p9, %p593_p5 }
  0x49   : > { %p596_p2 = pnand %p595_p1, %p589_p0 }
  0x4b   : > { %599 = shalt.err (!%p596_p2)
}
  0x4c   : > { %476 = dma.hbm_to_vmem [thread:$0]  (!%p832_p13), %s826_s9, 128, %s828_s10, %s178_s18  }
  0x4d   : > { %p954_p7 = scmp.ne.s32.totalorder %s948_s24, 0 }
  0x4e   : > { %s864_s19 = sand.u32 (!%p954_p7), 1, %s670_s13   ;;  %p955_p3 = scmp.ne.s32.totalorder (!%p954_p7), %s946_s22, 0 }
  0x4f   : > { %197 = sbr.rel (%p954_p7) target bundleno = 344 (0x158), region = 32  ;;  %s439_s25 = sshll.u32 (!%p954_p7), %s864_s19, 3 }
  0x50   : > { %s200_s27 = scalar_lea.sflag (!%p954_p7), [#allocation3], %s864_s19  ;;  %s203_s4 = scalar_lea.vmem (!%p954_p7), [#allocation2], %s439_s25 }
  0x56   : > { %653 = dma.done.wait (%p955_p3), %s200_s27, 128  }
  0x57   : > { %655 = vsyncadd (%p955_p3), %s200_s27, 4294967168  ;;  %p956_p13 = scmp.ne.s32.totalorder %s944_s20, 0 }
  0x59   : > { %657 = dma.done.wait (%p956_p13), [#allocation6], 256  }
  0x5a   : > { %659 = vsyncadd (%p956_p13), [#allocation6], 4294967040  ;;  %v692_v0 = vmov 0.0   ;;  %vm693_vm0 = vmmov 0   ;;  %v538_v1 = vld [vmem:[#allocation5] sm:$0xff]   ;;  %v539_v2 = vld [vmem:[#allocation5 + $0x8] sm:$0xff]  }
  0x5b   : > { %453 = vmatprep.subr.bf16.mxu0 %v692_v0  ;;  %457 = vmatprep.mubr.msk.bf16.mxu0 %vm693_vm0, %v692_v0  ;;  %v237_v3 = vld [vmem:[%s203_s4] sm:$0xff]  ;;  %vm262_vm1 = vcmask 261120   ;;  %s447_s20 = sshll.u32 %s678_s15, 7  ;;  %s232_s9 = scalar_lea.vmem [#allocation7], %s439_s25 }
  0x5c   : > { %454 = vmatpush3.bf16.msra.mxu0 %v538_v1  ;;  %v238_v4 = vpack.c.bf16 %v237_v3, %v237_v3  ;;  %v442_v5 = vld [vmem:[%s938_s2] ss:$0 sm:$0xff]  ;;  %s327_s10 = sshll.u32 %s232_s9, 4  ;;  %s887_s29 = scalar_lea.hbm %s939_s3, %s447_s20  ;;  %s889_s10 = int_to_ptr.vmem [resolvable:$true] %s327_s10 }
  0x5d   : > { %455 = vmatprep.subr.bf16.mxu0 %v692_v0  ;;  %s313_s6 = scalar_lea.sflag [#allocation4], %s864_s19  ;;  %s600_s26 = scalar_lea.vmem %s889_s10, 128 }
  0x5e   : > { %p601_p4 = scmp.ne.s32.totalorder %s889_s10, %s600_s26  ;;  %s694_s15 = smov [#allocation7]  }
  0x5f   : > { %s604_s7 = sshll.u32 %s694_s15, 4  ;;  %s605_s7 = int_to_ptr.vmem [resolvable:$false] %s604_s7 }
  0x60   : > { %456 = vmatpush3.bf16.msra.mxu0 %v539_v2  ;;  %p602_p6 = pnand %p601_p4, %p811_p10  ;;  %s606_s8 = scalar_lea.vmem %s605_s7, 256 }
  0x61   : > { %p607_p12 = scmp.lt.s32.totalorder %s889_s10, %s605_s7  ;;  %p608_p11 = scmp.lt.s32.totalorder %s606_s8, %s600_s26 }
  0x62   : > { %p603_p8 = pneg %p602_p6 }
  0x63   : > { %458 = vmatmul.mubr.msk.bf16.vlgmr.msra.gmra.mrb[0].mxu0 %vm262_vm1, %v238_v4  ;;  %p609_p0 = por %p608_p11, %p607_p12 }
  0x65   : > { %p610_p5 = pnand %p609_p0, %p603_p8 }
 0x136   : > { %v300_v6 = vpop.f32.mrb[0].mxu0 }
 0x137   : > { %v301_v7 = vadd.f32 %v442_v5, %v300_v6  ;;  %v459_v8 = vpop.f32.mrb[1].mxu0 }
 0x138   : > { %v303_v9 = vpop.f32.mrb[2].mxu0 }
 0x139   : > { %v307_v10 = vmul.f32 0.70710677, %v301_v7  ;;  %v460_v11 = vpop.f32.mrb[3].mxu0  ;;  %v306_v13 = vmul.f32 0.5, %v301_v7 }
 0x13b   : > { %540 = verf.f32 %v307_v10 }
 0x145   : > { %v541_v12 = vpop.eup %540 }
 0x146   : > { %v309_v14 = vadd.f32 1.0, %v541_v12 }
 0x148   : > { %v310_v15 = vmul.f32 %v309_v14, %v306_v13 }
 0x14a   : > { %311 = vst [vmem:[%s232_s9] sm:$0xff] %v310_v15 }
 0x14b   : > { %613 = shalt.err (!%p610_p5)
}
 0x14c   : > { %s614_s21 = scalar_lea.hbm %s887_s29, 128  ;;  %s618_s27 = scalar_lea.hbm %s939_s3, 256 }
 0x14d   : > { %p615_p9 = scmp.ne.s32.totalorder %s887_s29, %s614_s21  ;;  %p619_p7 = scmp.lt.u32.totalorder %s887_s29, %s939_s3 }
 0x14e   : > { %p620_p3 = scmp.lt.u32.totalorder %s618_s27, %s614_s21  ;;  %p622_p4 = scmp.lt.u32.totalorder %s614_s21, %s887_s29 }
 0x14f   : > { %p616_p1 = pnand %p615_p9, %p811_p10 }
 0x150   : > { %p621_p13 = por %p620_p3, %p619_p7 }
 0x151   : > { %p617_p2 = pneg %p616_p1 }
 0x152   : > { %p623_p6 = por %p622_p4, %p621_p13 }
 0x154   : > { %p624_p8 = pnand %p623_p6, %p617_p2 }
 0x156   : > { %627 = shalt.err (!%p624_p8)
}
 0x157   : > { %467 = dma.vmem_to_hbm [thread:$0]  (%p811_p10), %s889_s10, 128, %s887_s29, %s313_s6  }
 0x158 PF: > { %s339_s24 = sand.u32 1, %s666_s12   ;;  %p957_p12 = scmp.ne.s32.totalorder %s947_s23, 0 }
 0x159   : > { %p958_p11 = scmp.ge.s32.totalorder %s686_s17, 2  ;;  %s340_s20 = scalar_lea.sflag [#allocation4], %s339_s24 }
 0x15b   : > { %p478_p0 = pnand %p958_p11, %p957_p12 }
 0x15d   : > { %661 = dma.done.wait (!%p478_p0), %s340_s20, 128  }
 0x15e   : > { %663 = vsyncadd (!%p478_p0), %s340_s20, 4294967168  ;;  %s20_s17 = sadd.s32 1, %s686_s17   ;;  %s959_s12 = smov %s670_s13 }
 0x15f   : > { %p17_p5 = scmp.ge.s32.totalorder %s20_s17, 4   ;;  %s960_s13 = smov %s674_s14 }
 0x160   : > { %s961_s14 = smov %s820_s5  ;;  %s962_s15 = smov %s682_s16 }
 0x161   : > { %s963_s16 = smov %s965_s28  ;;  %19 = sbr.rel (!%p17_p5) target bundleno = 7 (0x7), region = 85 }
 0x168   :  { %345 = vsyncpa [#allocation3], 1 }
 0x169   :  { %347 = vsyncpa [#allocation3 + $0x1], 1 }
 0x16a   :  { %348 = vsyncpa [#allocation6], 1 }
 0x16b   :  { %349 = vsyncpa [#allocation4], 1 }
 0x16c   :  { %351 = vsyncpa [#allocation4 + $0x1], 1 }

// kernel: _bert_intermediate_2d.1
= control target key start
LH: loop header
LB: loop body
LE: loop exit
PB: predicated region body
PF: predicated region fallthrough
CT: control target
= control target key end

     0   :  { %8 = vsyncpa [#allocation3], 0  ;;  %s936_s0 = inlined_call_operand.hbm [shape: f32[16,32], index: 0, kind: input, shape index: {}]   ;;  %s937_s1 = inlined_call_operand.hbm [shape: bf16[32,128], index: 1, kind: input, shape index: {}]   ;;  %s938_s2 = inlined_call_operand.vmem [shape: f32[1,128], index: 2, kind: input, shape index: {}]   ;;  %s939_s3 = inlined_call_operand.hbm [shape: f32[16,128], index: 3, kind: output, shape index: {}]  }
   0x1   :  { %10 = vsyncpa [#allocation3 + $0x1], 0 }
   0x2   :  { %11 = vsyncpa [#allocation6], 0 }
   0x3   :  { %12 = vsyncpa [#allocation4], 0 }
   0x4   :  { %14 = vsyncpa [#allocation4 + $0x1], 0  ;;  %s715_s12 = smov 0   ;;  %s717_s13 = smov 0  }
   0x5   :  { %s719_s14 = smov 0   ;;  %s721_s15 = smov 0  }
   0x6   :  { %s723_s16 = smov 0   ;;  %s725_s17 = smov 0  }
   0x7 LB: > { %s430_s18 = sadd.s32 4294967295, %s686_s17   ;;  %s431_s19 = sadd.s32 4294967294, %s686_s17   ;;  %s686_s17 = sphi %s725_s17, %s20_s17   ;;  %s682_s16 = sphi %s723_s16, %s963_s16   ;;  %s678_s15 = sphi %s721_s15, %s962_s15   ;;  %s674_s14 = sphi %s719_s14, %s961_s14   ;;  %s670_s13 = sphi %s717_s13, %s960_s13   ;;  %s666_s12 = sphi %s715_s12, %s959_s12  }
   0x8   : > { %p52_p0 = scmp.ne.s32.totalorder %s670_s13, %s666_s12  ;;  %p749_p1 = scmp.eq.s32.totalorder %s430_s18, 0 }
   0x9   : > { %p753_p2 = scmp.eq.s32.totalorder %s430_s18, 1  ;;  %p136_p3 = scmp.eq.s32.totalorder %s431_s19, 1 }
   0xa   : > { %s944_s20 = scalar_select %p749_p1, 1, 0 }
   0xb   : > { %s945_s21 = scalar_select %p753_p2, 1, 0 }
   0xc   : > { %p759_p4 = por %p749_p1, %p52_p0  ;;  %p432_p5 = scmp.ge.s32.totalorder %s686_s17, 1 }
   0xd   : > { %p764_p6 = por %p136_p3, %p52_p0  ;;  %p143_p7 = scmp.lt.s32.totalorder %s686_s17, 3 }
   0xe   : > { %s946_s22 = scalar_select %p759_p4, 1, 0 }
   0xf   : > { %s947_s23 = scalar_select %p764_p6, 1, 0 }
  0x10   : > { %p769_p8 = pnand %p432_p5, %p143_p7  ;;  %s688_s25 = smov [#allocation5]  }
  0x11   : > { %s157_s26 = sshll.u32 %s688_s25, 4  ;;  %s29_s28 = sadd.s32 1, %s682_s16  ;;  %s158_s26 = int_to_ptr.vmem [resolvable:$true] %s157_s26 }
  0x12   : > { %s948_s24 = scalar_select %p769_p8, 1, 0 }
  0x13   : > { %p469_p9 = pneg %p769_p8  ;;  %s542_s4 = scalar_lea.hbm %s937_s1, 256 }
  0x14   : > { %p543_p12 = scmp.ne.s32.totalorder %s937_s1, %s542_s4  ;;  %p549_p5 = scmp.lt.u32.totalorder %s542_s4, %s937_s1 }
  0x15   : > { %p778_p11 = pnand %p469_p9, %p749_p1 }
  0x17   : > { %p544_p13 = pneg %p778_p11 }
  0x19   : > { %p545_p0 = pnand %p544_p13, %p543_p12 }
  0x1b   : > { %p546_p3 = pneg %p545_p0 }
  0x1d   : > { %p551_p7 = pnand %p549_p5, %p546_p3 }
  0x1f   : > { %554 = shalt.err (!%p551_p7)
}
  0x20   : > { %s555_s9 = scalar_lea.vmem %s158_s26, 256  ;;  %p563_p1 = scmp.lt.s32.totalorder %s158_s26, %s158_s26 }
  0x21   : > { %p556_p9 = scmp.ne.s32.totalorder %s158_s26, %s555_s9  ;;  %p564_p4 = scmp.lt.s32.totalorder %s555_s9, %s555_s9 }
  0x23   : > { %p558_p10 = pnand %p556_p9, %p544_p13  ;;  %p565_p8 = por %p564_p4, %p563_p1 }
  0x25   : > { %p559_p6 = pneg %p558_p10 }
  0x27   : > { %p566_p2 = pnand %p565_p8, %p559_p6 }
  0x29   : > { %569 = shalt.err (!%p566_p2)
}
  0x2a   : > { %s689_s10 = smov 64   ;;  %s690_s11 = smov 4  }
  0x2b   : > { %472 = dma.hbm_to_vmem [thread:$0]  (!%p778_p11), %s937_s1, 256, %s158_s26, [#allocation6], %s689_s10, %s689_s10, %s690_s11  }
  0x2c   : > { %p30_p1 = scmp.ge.s32.totalorder %s29_s28, 2  ;;  %s39_s25 = sadd.s32 1, %s674_s14 }
  0x2d   : > { %p46_p2 = scmp.ne.s32.totalorder %s674_s14, %s670_s13  ;;  %p47_p4 = scmp.eq.s32.totalorder %s686_s17, 0 }
  0x2e   : > { %s965_s28 = smov (%p30_p1, %s29_s28), 0  ;;  %p951_p8 = scmp.ne.s32.totalorder %s945_s21, 0 }
  0x2f   : > { %p805_p6 = por %p47_p4, %p46_p2  ;;  %s36_s27 = ssub.s32 %s682_s16, %s965_s28 }
  0x30   : > { %p811_p10 = por %p951_p8, %p46_p2  ;;  %p482_p12 = scmp.lt.s32.totalorder %s686_s17, 2 }
  0x31   : > { %p37_p11 = scmp.eq.s32.totalorder %s36_s27, 0  ;;  %s177_s26 = sand.u32 1, %s674_s14  }
  0x32   : > { %s436_s4 = sshll.u32 %s177_s26, 3  ;;  %s437_s6 = sshll.u32 %s682_s16, 7 }
  0x33   : > { %s820_s5 = scalar_select %p37_p11, %s674_s14, %s39_s25  }
  0x34   : > { %s826_s9 = scalar_lea.hbm %s936_s0, %s437_s6  ;;  %s181_s21 = scalar_lea.vmem [#allocation2], %s436_s4 }
  0x35   : > { %s188_s10 = sshll.u32 %s181_s21, 4  ;;  %p832_p13 = pnand %p482_p12, %p805_p6  ;;  %s828_s10 = int_to_ptr.vmem [resolvable:$true] %s188_s10 }
  0x36   : > { %s178_s18 = scalar_lea.sflag [#allocation3], %s177_s26  ;;  %s570_s19 = scalar_lea.hbm %s826_s9, 128 }
  0x37   : > { %p571_p0 = scmp.ne.s32.totalorder %s826_s9, %s570_s19  ;;  %p572_p3 = pneg %p832_p13 }
  0x38   : > { %s575_s4 = scalar_lea.hbm %s936_s0, 256  ;;  %p576_p9 = scmp.lt.u32.totalorder %s826_s9, %s936_s0 }
  0x39   : > { %p573_p5 = pnand %p572_p3, %p571_p0  ;;  %p577_p1 = scmp.lt.u32.totalorder %s575_s4, %s570_s19 }
  0x3a   : > { %p579_p4 = scmp.lt.u32.totalorder %s570_s19, %s826_s9 }
  0x3b   : > { %p574_p7 = pneg %p573_p5  ;;  %p578_p2 = por %p577_p1, %p576_p9 }
  0x3d   : > { %p580_p6 = por %p579_p4, %p578_p2 }
  0x3f   : > { %p581_p8 = pnand %p580_p6, %p574_p7 }
  0x41   : > { %584 = shalt.err (!%p581_p8)
}
  0x42   : > { %s585_s26 = scalar_lea.vmem %s828_s10, 128  ;;  %s691_s7 = smov [#allocation2]  }
  0x43   : > { %p586_p12 = scmp.ne.s32.totalorder %s828_s10, %s585_s26  ;;  %s590_s8 = sshll.u32 %s691_s7, 4  ;;  %s591_s8 = int_to_ptr.vmem [resolvable:$false] %s590_s8 }
  0x44   : > { %s592_s21 = scalar_lea.vmem %s591_s8, 256  ;;  %p593_p5 = scmp.lt.s32.totalorder %s828_s10, %s591_s8 }
  0x45   : > { %p588_p11 = pnand %p586_p12, %p572_p3  ;;  %p594_p9 = scmp.lt.s32.totalorder %s592_s21, %s585_s26 }
  0x47   : > { %p589_p0 = pneg %p588_p11  ;;  %p595_p1 = por %p594_p9, %p593_p5 }
  0x49   : > { %p596_p2 = pnand %p595_p1, %p589_p0 }
  0x4b   : > { %599 = shalt.err (!%p596_p2)
}
  0x4c   : > { %476 = dma.hbm_to_vmem [thread:$0]  (!%p832_p13), %s826_s9, 128, %s828_s10, %s178_s18  }
  0x4d   : > { %p954_p7 = scmp.ne.s32.totalorder %s948_s24, 0 }
  0x4e   : > { %s864_s19 = sand.u32 (!%p954_p7), 1, %s670_s13   ;;  %p955_p3 = scmp.ne.s32.totalorder (!%p954_p7), %s946_s22, 0 }
  0x4f   : > { %197 = sbr.rel (%p954_p7) target bundleno = 344 (0x158), region = 32  ;;  %s439_s25 = sshll.u32 (!%p954_p7), %s864_s19, 3 }
  0x50   : > { %s200_s27 = scalar_lea.sflag (!%p954_p7), [#allocation3], %s864_s19  ;;  %s203_s4 = scalar_lea.vmem (!%p954_p7), [#allocation2], %s439_s25 }
  0x56   : > { %653 = dma.done.wait (%p955_p3), %s200_s27, 128  }
  0x57   : > { %655 = vsyncadd (%p955_p3), %s200_s27, 4294967168  ;;  %p956_p13 = scmp.ne.s32.totalorder %s944_s20, 0 }
  0x59   : > { %657 = dma.done.wait (%p956_p13), [#allocation6], 256  }
  0x5a   : > { %659 = vsyncadd (%p956_p13), [#allocation6], 4294967040  ;;  %v692_v0 = vmov 0.0   ;;  %vm693_vm0 = vmmov 0   ;;  %v538_v1 = vld [vmem:[#allocation5] sm:$0xff]   ;;  %v539_v2 = vld [vmem:[#allocation5 + $0x8] sm:$0xff]  }
  0x5b   : > { %453 = vmatprep.subr.bf16.mxu0 %v692_v0  ;;  %457 = vmatprep.mubr.msk.bf16.mxu0 %vm693_vm0, %v692_v0  ;;  %v237_v3 = vld [vmem:[%s203_s4] sm:$0xff]  ;;  %vm262_vm1 = vcmask 261120   ;;  %s447_s20 = sshll.u32 %s678_s15, 7  ;;  %s232_s9 = scalar_lea.vmem [#allocation7], %s439_s25 }
  0x5c   : > { %454 = vmatpush3.bf16.msra.mxu0 %v538_v1  ;;  %v238_v4 = vpack.c.bf16 %v237_v3, %v237_v3  ;;  %v442_v5 = vld [vmem:[%s938_s2] ss:$0 sm:$0xff]  ;;  %s327_s10 = sshll.u32 %s232_s9, 4  ;;  %s887_s29 = scalar_lea.hbm %s939_s3, %s447_s20  ;;  %s889_s10 = int_to_ptr.vmem [resolvable:$true] %s327_s10 }
  0x5d   : > { %455 = vmatprep.subr.bf16.mxu0 %v692_v0  ;;  %s313_s6 = scalar_lea.sflag [#allocation4], %s864_s19  ;;  %s600_s26 = scalar_lea.vmem %s889_s10, 128 }
  0x5e   : > { %p601_p4 = scmp.ne.s32.totalorder %s889_s10, %s600_s26  ;;  %s694_s15 = smov [#allocation7]  }
  0x5f   : > { %s604_s7 = sshll.u32 %s694_s15, 4  ;;  %s605_s7 = int_to_ptr.vmem [resolvable:$false] %s604_s7 }
  0x60   : > { %456 = vmatpush3.bf16.msra.mxu0 %v539_v2  ;;  %p602_p6 = pnand %p601_p4, %p811_p10  ;;  %s606_s8 = scalar_lea.vmem %s605_s7, 256 }
  0x61   : > { %p607_p12 = scmp.lt.s32.totalorder %s889_s10, %s605_s7  ;;  %p608_p11 = scmp.lt.s32.totalorder %s606_s8, %s600_s26 }
  0x62   : > { %p603_p8 = pneg %p602_p6 }
  0x63   : > { %458 = vmatmul.mubr.msk.bf16.vlgmr.msra.gmra.mrb[0].mxu0 %vm262_vm1, %v238_v4  ;;  %p609_p0 = por %p608_p11, %p607_p12 }
  0x65   : > { %p610_p5 = pnand %p609_p0, %p603_p8 }
 0x136   : > { %v300_v6 = vpop.f32.mrb[0].mxu0 }
 0x137   : > { %v301_v7 = vadd.f32 %v442_v5, %v300_v6  ;;  %v459_v8 = vpop.f32.mrb[1].mxu0 }
 0x138   : > { %v303_v9 = vpop.f32.mrb[2].mxu0 }
 0x139   : > { %v307_v10 = vmul.f32 0.70710677, %v301_v7  ;;  %v460_v11 = vpop.f32.mrb[3].mxu0  ;;  %v306_v13 = vmul.f32 0.5, %v301_v7 }
 0x13b   : > { %540 = verf.f32 %v307_v10 }
 0x145   : > { %v541_v12 = vpop.eup %540 }
 0x146   : > { %v309_v14 = vadd.f32 1.0, %v541_v12 }
 0x148   : > { %v310_v15 = vmul.f32 %v309_v14, %v306_v13 }
 0x14a   : > { %311 = vst [vmem:[%s232_s9] sm:$0xff] %v310_v15 }
 0x14b   : > { %613 = shalt.err (!%p610_p5)
}
 0x14c   : > { %s614_s21 = scalar_lea.hbm %s887_s29, 128  ;;  %s618_s27 = scalar_lea.hbm %s939_s3, 256 }
 0x14d   : > { %p615_p9 = scmp.ne.s32.totalorder %s887_s29, %s614_s21  ;;  %p619_p7 = scmp.lt.u32.totalorder %s887_s29, %s939_s3 }
 0x14e   : > { %p620_p3 = scmp.lt.u32.totalorder %s618_s27, %s614_s21  ;;  %p622_p4 = scmp.lt.u32.totalorder %s614_s21, %s887_s29 }
 0x14f   : > { %p616_p1 = pnand %p615_p9, %p811_p10 }
 0x150   : > { %p621_p13 = por %p620_p3, %p619_p7 }
 0x151   : > { %p617_p2 = pneg %p616_p1 }
 0x152   : > { %p623_p6 = por %p622_p4, %p621_p13 }
 0x154   : > { %p624_p8 = pnand %p623_p6, %p617_p2 }
 0x156   : > { %627 = shalt.err (!%p624_p8)
}
 0x157   : > { %467 = dma.vmem_to_hbm [thread:$0]  (%p811_p10), %s889_s10, 128, %s887_s29, %s313_s6  }
 0x158 PF: > { %s339_s24 = sand.u32 1, %s666_s12   ;;  %p957_p12 = scmp.ne.s32.totalorder %s947_s23, 0 }
 0x159   : > { %p958_p11 = scmp.ge.s32.totalorder %s686_s17, 2  ;;  %s340_s20 = scalar_lea.sflag [#allocation4], %s339_s24 }
 0x15b   : > { %p478_p0 = pnand %p958_p11, %p957_p12 }
 0x15d   : > { %661 = dma.done.wait (!%p478_p0), %s340_s20, 128  }
 0x15e   : > { %663 = vsyncadd (!%p478_p0), %s340_s20, 4294967168  ;;  %s20_s17 = sadd.s32 1, %s686_s17   ;;  %s959_s12 = smov %s670_s13 }
 0x15f   : > { %p17_p5 = scmp.ge.s32.totalorder %s20_s17, 4   ;;  %s960_s13 = smov %s674_s14 }
 0x160   : > { %s961_s14 = smov %s820_s5  ;;  %s962_s15 = smov %s682_s16 }
 0x161   : > { %s963_s16 = smov %s965_s28  ;;  %19 = sbr.rel (!%p17_p5) target bundleno = 7 (0x7), region = 85 }
 0x168   :  { %345 = vsyncpa [#allocation3], 1 }
 0x169   :  { %347 = vsyncpa [#allocation3 + $0x1], 1 }
 0x16a   :  { %348 = vsyncpa [#allocation6], 1 }
 0x16b   :  { %349 = vsyncpa [#allocation4], 1 }
 0x16c   :  { %351 = vsyncpa [#allocation4 + $0x1], 1 }

</bundles_post_ra>
